<compile_context>
chip_gen: v6e
topology: v6e:2x2x1
jax: 0.10.0
libtpu: 0.0.40
codegen_flags: <defaults>
</compile_context>

<pallas_src>
import math

import jax
import jax.numpy as jnp
from jax.experimental import pallas as pl
from jax.experimental.pallas import tpu as pltpu


# ---------------------------------------------------------------------------
# Padding glue (faithful port of the PyTorch helpers; all shapes are static).
# ---------------------------------------------------------------------------
def _get_extra_padding_for_conv1d(length: int, kernel_size: int, stride: int,
                                  padding_total: int = 0) -> int:
    n_frames = (length - kernel_size + padding_total) / stride + 1
    ideal_length = (math.ceil(n_frames) - 1) * stride + (kernel_size - padding_total)
    return ideal_length - length


def _pad1d(x: jnp.ndarray, paddings, mode: str = "constant", value: float = 0.0):
    # x: (B, C, L); pads the last axis only (== torch F.pad with a 2-tuple).
    length = x.shape[-1]
    padding_left, padding_right = paddings
    assert padding_left >= 0 and padding_right >= 0, (padding_left, padding_right)
    if mode == "reflect":
        max_pad = max(padding_left, padding_right)
        extra_pad = 0
        if length <= max_pad:
            extra_pad = max_pad - length + 1
        if extra_pad:
            x = jnp.pad(x, ((0, 0), (0, 0), (0, extra_pad)))
        padded = jnp.pad(x, ((0, 0), (0, 0), (padding_left, padding_right)),
                         mode="reflect")
        end = padded.shape[-1] - extra_pad
        return padded[..., :end]
    else:
        return jnp.pad(x, ((0, 0), (0, 0), (padding_left, padding_right)),
                       constant_values=value)


# ---------------------------------------------------------------------------
# Pallas kernel factory: one (COUT_TILE, T_TILE) output tile.
# ---------------------------------------------------------------------------
def _make_kernel(*, K, Cin, stride, dilation, fuse_taps, has_halo):
    # tap k reads x[c, t*stride + k*dilation]; write k*dilation = q*stride + r
    taps = [divmod(k * dilation, stride) for k in range(K)]   # (q, r) per tap

    def kernel(*refs):
        if has_halo:
            x_ref, xh_ref, w_ref, b_ref, o_ref = refs
        else:
            x_ref, w_ref, b_ref, o_ref = refs
        t_tile = o_ref.shape[-1]

        if has_halo:
            # Fallback path: merge main tile + halo into one slab (extra copy).
            x_full = jnp.concatenate([x_ref[...], xh_ref[...]], axis=-1)

            def slab(q, r):
                return x_full[r * Cin:(r + 1) * Cin, q:q + t_tile]
        else:
            # Overlapped-window path: each tap is a plain slice of the window
            # (x_ref block is (1, R, T_TILE + HALO), element-indexed).
            def slab(q, r):
                return x_ref[0, r * Cin:(r + 1) * Cin, q:q + t_tile]

        if fuse_taps:
            # Small contraction: fuse all K taps into one deep MXU matmul.
            slabs = [slab(q, r) for q, r in taps]
            patch = slabs[0] if K == 1 else jnp.concatenate(slabs, axis=0)
            acc = jnp.dot(w_ref[...], patch, preferred_element_type=jnp.float32)
        else:
            # Wide channels: K accumulating matmuls, no im2col patch in VMEM.
            acc = None
            for k, (q, r) in enumerate(taps):
                part = jnp.dot(w_ref[:, k * Cin:(k + 1) * Cin], slab(q, r),
                               preferred_element_type=jnp.float32)
                acc = part if acc is None else acc + part

        o_ref[...] = (acc + b_ref[...].astype(jnp.float32)).astype(o_ref.dtype)

    return kernel


# ---------------------------------------------------------------------------
# pallas_call builder (two spec variants: overlapped window / halo fallback).
# ---------------------------------------------------------------------------
def _build_call(*, B, R, Cout_p, COUT_TILE, Kcin, T_TILE, HALO, nt, nco,
                kernel, out_dtype, vmem_limit, cost, overlap, single_buf_wb):
    wb_kw = {"pipeline_mode": pl.Buffered(1)} if single_buf_wb else {}
    w_spec = pl.BlockSpec((COUT_TILE, Kcin), lambda b, co, t: (co, 0), **wb_kw)
    b_spec = pl.BlockSpec((COUT_TILE, 1), lambda b, co, t: (co, 0), **wb_kw)
    out_spec = pl.BlockSpec((None, COUT_TILE, T_TILE), lambda b, co, t: (b, co, t))

    if overlap:
        # Element-indexed overlapped window: frames [t*T_TILE, t*T_TILE+T_TILE+HALO)
        x_specs = [pl.BlockSpec(
            (pl.Element(1), pl.Element(R), pl.Element(T_TILE + HALO)),
            lambda b, co, t: (b, 0, t * T_TILE))]
        n_x = 1
    else:
        hb = T_TILE // HALO
        x_specs = [
            pl.BlockSpec((None, R, T_TILE), lambda b, co, t: (b, 0, t)),
            pl.BlockSpec((None, R, HALO), lambda b, co, t: (b, 0, (t + 1) * hb)),
        ]
        n_x = 2

    call = pl.pallas_call(
        kernel,
        out_shape=jax.ShapeDtypeStruct((B, Cout_p, nt * T_TILE), out_dtype),
        grid=(B, nco, nt),
        in_specs=x_specs + [w_spec, b_spec],
        out_specs=out_spec,
        compiler_params=pltpu.CompilerParams(
            dimension_semantics=("parallel", "parallel", "parallel"),
            vmem_limit_bytes=vmem_limit),
        cost_estimate=cost,
    )
    return call, n_x


# ---------------------------------------------------------------------------
# Wrapper: padding, polyphase relayout, tile sizing, pallas_call.
# ---------------------------------------------------------------------------
def streamable_conv1d(x, weight, bias, *, stride=1, dilation=1,
                      padding_mode="reflect", compute_dtype=None):
    """Forward pass of StreamableConv1d (norm='none', bias=True).

    x: (B, Cin, L), weight: (Cout, Cin, K), bias: (Cout,) -> (B, Cout, T).
    """
    B, Cin, L = x.shape
    Cout, Cin_w, K = weight.shape
    assert Cin_w == Cin, (Cin_w, Cin)

    # --- padding math, exactly as the PyTorch module ---
    k_eff = (K - 1) * dilation + 1
    padding_total = k_eff - stride
    if padding_total < 0:
        # The PyTorch reference also rejects this (negative pad in F.pad).
        raise ValueError(f"stride ({stride}) > effective kernel size ({k_eff}) "
                         "is not supported by StreamableConv1d")
    extra_padding = _get_extra_padding_for_conv1d(L, k_eff, stride, padding_total)
    padding_right = padding_total // 2
    padding_left = padding_total - padding_right
    xp = _pad1d(x, (padding_left, padding_right + extra_padding), mode=padding_mode)
    Lp = xp.shape[-1]
    T = (Lp - k_eff) // stride + 1

    out_dtype = x.dtype
    # Cast BEFORE channel padding / polyphase relayout so that HBM pass is
    # already in the narrow dtype.  Accumulation + bias stay f32.  Note: with
    # bf16 the 1e-4 parity check below would not hold (expected precision loss).
    if compute_dtype is not None:
        xp = xp.astype(compute_dtype)
        weight = weight.astype(compute_dtype)
    in_dtype = xp.dtype
    in_isz = jnp.dtype(in_dtype).itemsize
    out_isz = jnp.dtype(out_dtype).itemsize

    # --- pad channels to the sublane tile so sublane slices stay aligned ---
    sub = {4: 8, 2: 16, 1: 32}.get(in_isz, 8)
    Cin_p = -(-Cin // sub) * sub
    if Cin_p != Cin:
        xp = jnp.pad(xp, ((0, 0), (0, Cin_p - Cin), (0, 0)))
        weight = jnp.pad(weight, ((0, 0), (0, Cin_p - Cin), (0, 0)))

    # --- Cout tiling: bound weight residency regardless of layer size ---
    if Cout > 256:
        COUT_TILE = 256
        Cout_p = -(-Cout // COUT_TILE) * COUT_TILE
    else:
        COUT_TILE = Cout
        Cout_p = Cout
    nco = Cout_p // COUT_TILE

    # fuse taps into one deep matmul only while the contraction is below the
    # v6e/v7x MXU depth; otherwise accumulate K matmuls (no im2col patch).
    fuse_taps = (K * Cin_p) <= 256

    # --- polyphase decomposition parameters ---
    q_max = ((K - 1) * dilation) // stride
    HALO = 128 * max(1, -(-q_max // 128))          # halo frames, multiple of 128
    R = stride * Cin_p                             # polyphase rows

    # --- generation-aware tile budget / VMEM limit ---
    try:
        vmem_cap = int(pltpu.get_tpu_info().vmem_capacity_bytes)
    except Exception:
        vmem_cap = 64 * 2 ** 20                    # conservative (v7x per-TC)
    vmem_cap = max(vmem_cap, 32 * 2 ** 20)
    budget = int(0.35 * vmem_cap)                  # ~22 MiB v7x, ~45 MiB v5e/v6e

    per_col = 2 * R * in_isz + 2 * COUT_TILE * out_isz
    per_col += (K * Cin_p if fuse_taps else 2 * Cin_p) * in_isz + 2 * COUT_TILE * 4
    fixed = (2 * R * HALO * in_isz
             + 2 * COUT_TILE * K * Cin_p * in_isz + 2 * COUT_TILE * 128 * 4)
    t_fit = max(HALO, (budget - fixed) // max(1, per_col))
    t_need = -(-T // HALO) * HALO                  # don't over-pad tiny inputs
    T_TILE = max(HALO, (min(8192, t_fit, t_need) // HALO) * HALO)

    nt = -(-T // T_TILE)
    T_pad = nt * T_TILE
    Lf_total = T_pad + HALO
    Lp_needed = Lf_total * stride
    assert Lp_needed >= Lp, (Lp_needed, Lp)
    xp = jnp.pad(xp, ((0, 0), (0, 0), (0, Lp_needed - Lp)))

    # --- polyphase relayout (identity for stride == 1) ---
    # x_poly[b, r*Cin_p + c, f] == xp[b, c, f*stride + r]
    if stride > 1:
        # TODO(synk): this is one extra HBM pass; could be fused into the
        # producer or replaced by strided in-kernel reads for mem-bound layers.
        x_poly = (xp.reshape(B, Cin_p, Lf_total, stride)
                    .transpose(0, 3, 1, 2)
                    .reshape(B, R, Lf_total))
    else:
        x_poly = xp

    # --- fused weights / bias ---
    w_f = jnp.transpose(weight, (0, 2, 1)).reshape(Cout, K * Cin_p)  # [o, k*Cin_p+c]
    b_col = bias.reshape(Cout, 1).astype(jnp.float32)
    if Cout_p != Cout:
        w_f = jnp.pad(w_f, ((0, Cout_p - Cout), (0, 0)))
        b_col = jnp.pad(b_col, ((0, Cout_p - Cout), (0, 0)))

    est = per_col * T_TILE + fixed
    vmem_limit = int(min(0.85 * vmem_cap, max(32 * 2 ** 20, 2 * est)))

    cost = pl.CostEstimate(
        flops=int(2 * B * Cout * T * K * Cin),
        transcendentals=0,
        bytes_accessed=int(x_poly.size * in_isz + w_f.size * in_isz
                           + b_col.size * 4 + B * Cout_p * T_pad * out_isz))

    # Try the optimized specs first; fall back to the previously validated
    # halo+concat specs if this build rejects Element windows / Buffered(1).
    errs = []
    for overlap, single_buf in ((True, True), (True, False), (False, False)):
        kernel = _make_kernel(K=K, Cin=Cin_p, stride=stride, dilation=dilation,
                              fuse_taps=fuse_taps, has_halo=not overlap)
        try:
            call, n_x = _build_call(
                B=B, R=R, Cout_p=Cout_p, COUT_TILE=COUT_TILE, Kcin=K * Cin_p,
                T_TILE=T_TILE, HALO=HALO, nt=nt, nco=nco, kernel=kernel,
                out_dtype=out_dtype, vmem_limit=vmem_limit, cost=cost,
                overlap=overlap, single_buf_wb=single_buf)
            out = call(*((x_poly,) * n_x), w_f, b_col)
            out = jax.block_until_ready(out)
            break
        except Exception as e:      # optional feature unsupported -> next config
            errs.append(e)
    else:
        raise errs[-1]

    if Cout_p != Cout or T_pad != T:
        out = out[:, :Cout, :T]
    return out


# ---------------------------------------------------------------------------
# Reference (plain JAX) for validation.
# ---------------------------------------------------------------------------
def _reference(x, weight, bias, *, stride, dilation, padding_mode):
    B, Cin, L = x.shape
    Cout, _, K = weight.shape
    k_eff = (K - 1) * dilation + 1
    padding_total = k_eff - stride
    extra = _get_extra_padding_for_conv1d(L, k_eff, stride, padding_total)
    p_right = padding_total // 2
    p_left = padding_total - p_right
    xp = _pad1d(x, (p_left, p_right + extra), mode=padding_mode)
    y = jax.lax.conv_general_dilated(
        xp, weight, window_strides=(stride,), padding="VALID",
        rhs_dilation=(dilation,), dimension_numbers=("NCH", "OIH", "NCH"),
        precision=jax.lax.Precision.HIGHEST)
    return y + bias[None, :, None]


if __name__ == "__main__":
    def _run_case(name, B, Cin, L, Cout, K, S, D, mode, key):
        kx, kw, kb = jax.random.split(key, 3)
        x = jax.random.normal(kx, (B, Cin, L), dtype=jnp.float32)
        # Deterministic init matching nn.Conv1d's default uniform(-bound, bound).
        bound = 1.0 / math.sqrt(Cin * K)
        weight = jax.random.uniform(kw, (Cout, Cin, K), jnp.float32, -bound, bound)
        bias = jax.random.uniform(kb, (Cout,), jnp.float32, -bound, bound)

        out = streamable_conv1d(x, weight, bias, stride=S, dilation=D,
                                padding_mode=mode)
        out = jax.block_until_ready(out)

        ref = _reference(x, weight, bias, stride=S, dilation=D, padding_mode=mode)
        assert out.shape == ref.shape, (name, out.shape, ref.shape)
        err = float(jnp.max(jnp.abs(out - ref)))
        assert err < 1e-4, (name, err)

    key = jax.random.PRNGKey(0)
    k1, k2, k3, k4 = jax.random.split(key, 4)
    # Primary small config: batch=2, in=4, out=8, K=4, stride=2, reflect pad.
    _run_case("k4_s2_d1", B=2, Cin=4, L=16, Cout=8, K=4, S=2, D=1,
              mode="reflect", key=k1)
    # stride==1 with dilation and non-multiple-of-8 channels, constant pad.
    _run_case("k3_s1_d2", B=2, Cin=3, L=16, Cout=5, K=3, S=1, D=2,
              mode="constant", key=k2)
    # strided + dilated with extra_padding > 0, reflect pad.
    _run_case("k3_s2_d2", B=2, Cin=2, L=19, Cout=3, K=3, S=2, D=2,
              mode="reflect", key=k3)
    # exercises the accumulate-matmul (K*Cin_p > 256) and Cout-tiling paths.
    _run_case("k7_s2_wide", B=1, Cin=40, L=200, Cout=260, K=7, S=2, D=1,
              mode="constant", key=k4)

    print("KERNEL_OK")
</pallas_src>

<mosaic_0001>
module attributes {stable_mosaic.version = 11 : i64} {
  func.func @kernel(%arg0: i32, %arg1: i32, %arg2: i32, %arg3: memref<1x16x256xf32, #tpu.memory_space<vmem>>, %arg4: memref<8x32xf32, #tpu.memory_space<vmem>>, %arg5: memref<8x1xf32, #tpu.memory_space<vmem>>, %arg6: memref<1x8x128xf32, #tpu.memory_space<vmem>>) attributes {dimension_semantics = [#tpu.dimension_semantics<parallel>, #tpu.dimension_semantics<parallel>, #tpu.dimension_semantics<parallel>], iteration_bounds = array<i64: 2, 1, 1>, scalar_prefetch = 0 : i64, scratch_operands = 0 : i64, tpu.core_type = #tpu.core_type<tc>, window_params = [{transform_indices = @transform_0, window_bounds = array<i64: 1, 16, 256>, window_kind = #tpu.element_window<[0, 0, 0], [0, 0, 0]>}, {pipeline_mode = #tpu.pipeline_mode<synchronous>, transform_indices = @transform_1, window_bounds = array<i64: 8, 32>}, {pipeline_mode = #tpu.pipeline_mode<synchronous>, transform_indices = @transform_2, window_bounds = array<i64: 8, 1>}, {transform_indices = @transform_3, window_bounds = array<i64: 1, 8, 128>}]} {
    %c0 = arith.constant 0 : index
    %c0_0 = arith.constant 0 : index
    %c0_1 = arith.constant 0 : index
    %0 = vector.load %arg3[%c0, %c0_0, %c0_1] : memref<1x16x256xf32, #tpu.memory_space<vmem>>, vector<1x8x128xf32>
    %1 = vector.shape_cast %0 : vector<1x8x128xf32> to vector<8x128xf32>
    %c0_2 = arith.constant 0 : index
    %c8 = arith.constant 8 : index
    %c0_3 = arith.constant 0 : index
    %2 = vector.load %arg3[%c0_2, %c8, %c0_3] : memref<1x16x256xf32, #tpu.memory_space<vmem>>, vector<1x8x128xf32>
    %3 = vector.shape_cast %2 : vector<1x8x128xf32> to vector<8x128xf32>
    %c0_4 = arith.constant 0 : index
    %c0_5 = arith.constant 0 : index
    %c1 = arith.constant 1 : index
    %4 = vector.load %arg3[%c0_4, %c0_5, %c1] : memref<1x16x256xf32, #tpu.memory_space<vmem>>, vector<1x8x128xf32>
    %5 = vector.shape_cast %4 : vector<1x8x128xf32> to vector<8x128xf32>
    %c0_6 = arith.constant 0 : index
    %c8_7 = arith.constant 8 : index
    %c1_8 = arith.constant 1 : index
    %6 = vector.load %arg3[%c0_6, %c8_7, %c1_8] : memref<1x16x256xf32, #tpu.memory_space<vmem>>, vector<1x8x128xf32>
    %7 = vector.shape_cast %6 : vector<1x8x128xf32> to vector<8x128xf32>
    %8 = tpu.concatenate %1, %3, %5, %7 in 0 : vector<8x128xf32>, vector<8x128xf32>, vector<8x128xf32>, vector<8x128xf32> -> vector<32x128xf32>
    %c0_9 = arith.constant 0 : index
    %c0_10 = arith.constant 0 : index
    %9 = vector.load %arg4[%c0_9, %c0_10] : memref<8x32xf32, #tpu.memory_space<vmem>>, vector<8x32xf32>
    %cst = arith.constant dense<0.000000e+00> : vector<8x128xf32>
    %10 = tpu.matmul %9, %8, %cst {dimension_numbers = #tpu.dot_dimension_numbers<[1], [0], [0], [1], [0, 0, 1, 1], [], []>} : vector<8x32xf32>, vector<32x128xf32>, vector<8x128xf32> -> vector<8x128xf32>
    %c0_11 = arith.constant 0 : index
    %c0_12 = arith.constant 0 : index
    %11 = vector.load %arg5[%c0_11, %c0_12] : memref<8x1xf32, #tpu.memory_space<vmem>>, vector<8x1xf32>
    %12 = vector.broadcast %11 : vector<8x1xf32> to vector<8x128xf32>
    %13 = arith.addf %10, %12 : vector<8x128xf32>
    %c0_13 = arith.constant 0 : index
    %c0_14 = arith.constant 0 : index
    %c0_15 = arith.constant 0 : index
    %14 = vector.load %arg6[%c0_13, %c0_14, %c0_15] : memref<1x8x128xf32, #tpu.memory_space<vmem>>, vector<1x8x128xf32>
    %15 = vector.shape_cast %14 : vector<1x8x128xf32> to vector<8x128xf32>
    %16 = vector.shape_cast %13 : vector<8x128xf32> to vector<1x8x128xf32>
    tpu.vector_store %arg6[%c0_13, %c0_14, %c0_15], %16 {strides = array<i32>} : memref<1x8x128xf32, #tpu.memory_space<vmem>>, vector<1x8x128xf32>,
    return
  }
  func.func @transform_0(%arg0: i32, %arg1: i32, %arg2: i32) -> (i32, i32, i32) {
    %c128_i32 = arith.constant 128 : i32
    %0 = arith.muli %arg2, %c128_i32 : i32
    %c0_i32 = arith.constant 0 : i32
    %c0_i32_0 = arith.constant 0 : i32
    return %arg0, %c0_i32, %0 : i32, i32, i32
  }
  func.func @transform_1(%arg0: i32, %arg1: i32, %arg2: i32) -> (i32, i32) {
    %c0_i32 = arith.constant 0 : i32
    %c0_i32_0 = arith.constant 0 : i32
    return %arg1, %c0_i32 : i32, i32
  }
  func.func @transform_2(%arg0: i32, %arg1: i32, %arg2: i32) -> (i32, i32) {
    %c0_i32 = arith.constant 0 : i32
    %c0_i32_0 = arith.constant 0 : i32
    return %arg1, %c0_i32 : i32, i32
  }
  func.func @transform_3(%arg0: i32, %arg1: i32, %arg2: i32) -> (i32, i32, i32) {
    %c0_i32 = arith.constant 0 : i32
    return %arg0, %arg1, %arg2 : i32, i32, i32
  }
}

module attributes {stable_mosaic.version = 11 : i64} {
  func.func @kernel(%arg0: i32, %arg1: i32, %arg2: i32, %arg3: memref<1x16x256xf32, #tpu.memory_space<vmem>>, %arg4: memref<8x32xf32, #tpu.memory_space<vmem>>, %arg5: memref<8x1xf32, #tpu.memory_space<vmem>>, %arg6: memref<1x8x128xf32, #tpu.memory_space<vmem>>) attributes {dimension_semantics = [#tpu.dimension_semantics<parallel>, #tpu.dimension_semantics<parallel>, #tpu.dimension_semantics<parallel>], iteration_bounds = array<i64: 2, 1, 1>, scalar_prefetch = 0 : i64, scratch_operands = 0 : i64, tpu.core_type = #tpu.core_type<tc>, window_params = [{transform_indices = @transform_0, window_bounds = array<i64: 1, 16, 256>, window_kind = #tpu.element_window<[0, 0, 0], [0, 0, 0]>}, {transform_indices = @transform_1, window_bounds = array<i64: 8, 32>}, {transform_indices = @transform_2, window_bounds = array<i64: 8, 1>}, {transform_indices = @transform_3, window_bounds = array<i64: 1, 8, 128>}]} {
    %c0 = arith.constant 0 : index
    %c0_0 = arith.constant 0 : index
    %c0_1 = arith.constant 0 : index
    %0 = vector.load %arg3[%c0, %c0_0, %c0_1] : memref<1x16x256xf32, #tpu.memory_space<vmem>>, vector<1x8x128xf32>
    %1 = vector.shape_cast %0 : vector<1x8x128xf32> to vector<8x128xf32>
    %c0_2 = arith.constant 0 : index
    %c8 = arith.constant 8 : index
    %c0_3 = arith.constant 0 : index
    %2 = vector.load %arg3[%c0_2, %c8, %c0_3] : memref<1x16x256xf32, #tpu.memory_space<vmem>>, vector<1x8x128xf32>
    %3 = vector.shape_cast %2 : vector<1x8x128xf32> to vector<8x128xf32>
    %c0_4 = arith.constant 0 : index
    %c0_5 = arith.constant 0 : index
    %c1 = arith.constant 1 : index
    %4 = vector.load %arg3[%c0_4, %c0_5, %c1] : memref<1x16x256xf32, #tpu.memory_space<vmem>>, vector<1x8x128xf32>
    %5 = vector.shape_cast %4 : vector<1x8x128xf32> to vector<8x128xf32>
    %c0_6 = arith.constant 0 : index
    %c8_7 = arith.constant 8 : index
    %c1_8 = arith.constant 1 : index
    %6 = vector.load %arg3[%c0_6, %c8_7, %c1_8] : memref<1x16x256xf32, #tpu.memory_space<vmem>>, vector<1x8x128xf32>
    %7 = vector.shape_cast %6 : vector<1x8x128xf32> to vector<8x128xf32>
    %8 = tpu.concatenate %1, %3, %5, %7 in 0 : vector<8x128xf32>, vector<8x128xf32>, vector<8x128xf32>, vector<8x128xf32> -> vector<32x128xf32>
    %c0_9 = arith.constant 0 : index
    %c0_10 = arith.constant 0 : index
    %9 = vector.load %arg4[%c0_9, %c0_10] : memref<8x32xf32, #tpu.memory_space<vmem>>, vector<8x32xf32>
    %cst = arith.constant dense<0.000000e+00> : vector<8x128xf32>
    %10 = tpu.matmul %9, %8, %cst {dimension_numbers = #tpu.dot_dimension_numbers<[1], [0], [0], [1], [0, 0, 1, 1], [], []>} : vector<8x32xf32>, vector<32x128xf32>, vector<8x128xf32> -> vector<8x128xf32>
    %c0_11 = arith.constant 0 : index
    %c0_12 = arith.constant 0 : index
    %11 = vector.load %arg5[%c0_11, %c0_12] : memref<8x1xf32, #tpu.memory_space<vmem>>, vector<8x1xf32>
    %12 = vector.broadcast %11 : vector<8x1xf32> to vector<8x128xf32>
    %13 = arith.addf %10, %12 : vector<8x128xf32>
    %c0_13 = arith.constant 0 : index
    %c0_14 = arith.constant 0 : index
    %c0_15 = arith.constant 0 : index
    %14 = vector.load %arg6[%c0_13, %c0_14, %c0_15] : memref<1x8x128xf32, #tpu.memory_space<vmem>>, vector<1x8x128xf32>
    %15 = vector.shape_cast %14 : vector<1x8x128xf32> to vector<8x128xf32>
    %16 = vector.shape_cast %13 : vector<8x128xf32> to vector<1x8x128xf32>
    tpu.vector_store %arg6[%c0_13, %c0_14, %c0_15], %16 {strides = array<i32>} : memref<1x8x128xf32, #tpu.memory_space<vmem>>, vector<1x8x128xf32>,
    return
  }
  func.func @transform_0(%arg0: i32, %arg1: i32, %arg2: i32) -> (i32, i32, i32) {
    %c128_i32 = arith.constant 128 : i32
    %0 = arith.muli %arg2, %c128_i32 : i32
    %c0_i32 = arith.constant 0 : i32
    %c0_i32_0 = arith.constant 0 : i32
    return %arg0, %c0_i32, %0 : i32, i32, i32
  }
  func.func @transform_1(%arg0: i32, %arg1: i32, %arg2: i32) -> (i32, i32) {
    %c0_i32 = arith.constant 0 : i32
    %c0_i32_0 = arith.constant 0 : i32
    return %arg1, %c0_i32 : i32, i32
  }
  func.func @transform_2(%arg0: i32, %arg1: i32, %arg2: i32) -> (i32, i32) {
    %c0_i32 = arith.constant 0 : i32
    %c0_i32_0 = arith.constant 0 : i32
    return %arg1, %c0_i32 : i32, i32
  }
  func.func @transform_3(%arg0: i32, %arg1: i32, %arg2: i32) -> (i32, i32, i32) {
    %c0_i32 = arith.constant 0 : i32
    return %arg0, %arg1, %arg2 : i32, i32, i32
  }
}

module attributes {stable_mosaic.version = 11 : i64} {
  func.func @kernel(%arg0: i32, %arg1: i32, %arg2: i32, %arg3: memref<1x16x128xf32, #tpu.memory_space<vmem>>, %arg4: memref<1x16x128xf32, #tpu.memory_space<vmem>>, %arg5: memref<8x32xf32, #tpu.memory_space<vmem>>, %arg6: memref<8x1xf32, #tpu.memory_space<vmem>>, %arg7: memref<1x8x128xf32, #tpu.memory_space<vmem>>) attributes {dimension_semantics = [#tpu.dimension_semantics<parallel>, #tpu.dimension_semantics<parallel>, #tpu.dimension_semantics<parallel>], iteration_bounds = array<i64: 2, 1, 1>, scalar_prefetch = 0 : i64, scratch_operands = 0 : i64, tpu.core_type = #tpu.core_type<tc>, window_params = [{transform_indices = @transform_0, window_bounds = array<i64: 1, 16, 128>}, {transform_indices = @transform_1, window_bounds = array<i64: 1, 16, 128>}, {transform_indices = @transform_2, window_bounds = array<i64: 8, 32>}, {transform_indices = @transform_3, window_bounds = array<i64: 8, 1>}, {transform_indices = @transform_4, window_bounds = array<i64: 1, 8, 128>}]} {
    %c0 = arith.constant 0 : index
    %c0_0 = arith.constant 0 : index
    %c0_1 = arith.constant 0 : index
    %0 = vector.load %arg3[%c0, %c0_0, %c0_1] : memref<1x16x128xf32, #tpu.memory_space<vmem>>, vector<1x16x128xf32>
    %1 = vector.shape_cast %0 : vector<1x16x128xf32> to vector<16x128xf32>
    %c0_2 = arith.constant 0 : index
    %c0_3 = arith.constant 0 : index
    %c0_4 = arith.constant 0 : index
    %2 = vector.load %arg4[%c0_2, %c0_3, %c0_4] : memref<1x16x128xf32, #tpu.memory_space<vmem>>, vector<1x16x128xf32>
    %3 = vector.shape_cast %2 : vector<1x16x128xf32> to vector<16x128xf32>
    %4 = tpu.concatenate %1, %3 in 1 : vector<16x128xf32>, vector<16x128xf32> -> vector<16x256xf32>
    %5 = vector.extract_strided_slice %4 {offsets = [0, 0], sizes = [8, 128], strides = [1, 1]} : vector<16x256xf32> to vector<8x128xf32>
    %6 = vector.extract_strided_slice %4 {offsets = [8, 0], sizes = [8, 128], strides = [1, 1]} : vector<16x256xf32> to vector<8x128xf32>
    %7 = vector.extract_strided_slice %4 {offsets = [0, 1], sizes = [8, 128], strides = [1, 1]} : vector<16x256xf32> to vector<8x128xf32>
    %8 = vector.extract_strided_slice %4 {offsets = [8, 1], sizes = [8, 128], strides = [1, 1]} : vector<16x256xf32> to vector<8x128xf32>
    %9 = tpu.concatenate %5, %6, %7, %8 in 0 : vector<8x128xf32>, vector<8x128xf32>, vector<8x128xf32>, vector<8x128xf32> -> vector<32x128xf32>
    %c0_5 = arith.constant 0 : index
    %c0_6 = arith.constant 0 : index
    %10 = vector.load %arg5[%c0_5, %c0_6] : memref<8x32xf32, #tpu.memory_space<vmem>>, vector<8x32xf32>
    %cst = arith.constant dense<0.000000e+00> : vector<8x128xf32>
    %11 = tpu.matmul %10, %9, %cst {dimension_numbers = #tpu.dot_dimension_numbers<[1], [0], [0], [1], [0, 0, 1, 1], [], []>} : vector<8x32xf32>, vector<32x128xf32>, vector<8x128xf32> -> vector<8x128xf32>
    %c0_7 = arith.constant 0 : index
    %c0_8 = arith.constant 0 : index
    %12 = vector.load %arg6[%c0_7, %c0_8] : memref<8x1xf32, #tpu.memory_space<vmem>>, vector<8x1xf32>
    %13 = vector.broadcast %12 : vector<8x1xf32> to vector<8x128xf32>
    %14 = arith.addf %11, %13 : vector<8x128xf32>
    %c0_9 = arith.constant 0 : index
    %c0_10 = arith.constant 0 : index
    %c0_11 = arith.constant 0 : index
    %15 = vector.load %arg7[%c0_9, %c0_10, %c0_11] : memref<1x8x128xf32, #tpu.memory_space<vmem>>, vector<1x8x128xf32>
    %16 = vector.shape_cast %15 : vector<1x8x128xf32> to vector<8x128xf32>
    %17 = vector.shape_cast %14 : vector<8x128xf32> to vector<1x8x128xf32>
    tpu.vector_store %arg7[%c0_9, %c0_10, %c0_11], %17 {strides = array<i32>} : memref<1x8x128xf32, #tpu.memory_space<vmem>>, vector<1x8x128xf32>,
    return
  }
  func.func @transform_0(%arg0: i32, %arg1: i32, %arg2: i32) -> (i32, i32, i32) {
    %c0_i32 = arith.constant 0 : i32
    %c0_i32_0 = arith.constant 0 : i32
    return %arg0, %c0_i32, %arg2 : i32, i32, i32
  }
  func.func @transform_1(%arg0: i32, %arg1: i32, %arg2: i32) -> (i32, i32, i32) {
    %c1_i32 = arith.constant 1 : i32
    %0 = arith.addi %arg2, %c1_i32 : i32
    %c1_i32_0 = arith.constant 1 : i32
    %1 = arith.muli %0, %c1_i32_0 : i32
    %c0_i32 = arith.constant 0 : i32
    %c0_i32_1 = arith.constant 0 : i32
    return %arg0, %c0_i32, %1 : i32, i32, i32
  }
  func.func @transform_2(%arg0: i32, %arg1: i32, %arg2: i32) -> (i32, i32) {
    %c0_i32 = arith.constant 0 : i32
    %c0_i32_0 = arith.constant 0 : i32
    return %arg1, %c0_i32 : i32, i32
  }
  func.func @transform_3(%arg0: i32, %arg1: i32, %arg2: i32) -> (i32, i32) {
    %c0_i32 = arith.constant 0 : i32
    %c0_i32_0 = arith.constant 0 : i32
    return %arg1, %c0_i32 : i32, i32
  }
  func.func @transform_4(%arg0: i32, %arg1: i32, %arg2: i32) -> (i32, i32, i32) {
    %c0_i32 = arith.constant 0 : i32
    return %arg0, %arg1, %arg2 : i32, i32, i32
  }
}

</mosaic_0001>

<bundles_post_ra>
// kernel: tpu_custom_call.1
= control target key start
LH: loop header
LB: loop body
LE: loop exit
PB: predicated region body
PF: predicated region fallthrough
CT: control target
= control target key end

     0   :  { %8 = vsyncpa [#allocation3], 0  ;;  %s906_s0 = inlined_call_operand.hbm [shape: f32[2,16,256], index: 0, kind: input, shape index: {}]   ;;  %s907_s1 = inlined_call_operand.vmem [shape: f32[8,32], index: 1, kind: input, shape index: {}]   ;;  %s908_s2 = inlined_call_operand.vmem [shape: f32[8,1], index: 2, kind: input, shape index: {}]   ;;  %s909_s3 = inlined_call_operand.hbm [shape: f32[2,8,128], index: 3, kind: output, shape index: {}]  }
   0x1   :  { %10 = vsyncpa [#allocation3 + $0x1], 0 }
   0x2   :  { %11 = vsyncpa [#allocation4], 0 }
   0x3   :  { %13 = vsyncpa [#allocation4 + $0x1], 0  ;;  %s761_s12 = smov 0   ;;  %s763_s13 = smov 0  }
   0x4   :  { %s765_s14 = smov 0   ;;  %s767_s15 = smov 0  }
   0x5   :  { %s769_s16 = smov 0   ;;  %s771_s17 = smov 0  }
   0x6 LB: > { %s520_s18 = sadd.s32 4294967295, %s731_s17   ;;  %s521_s19 = sadd.s32 4294967294, %s731_s17   ;;  %s731_s17 = sphi %s771_s17, %s19_s17   ;;  %s727_s16 = sphi %s769_s16, %s920_s16   ;;  %s723_s15 = sphi %s767_s15, %s919_s15   ;;  %s719_s14 = sphi %s765_s14, %s918_s14   ;;  %s715_s13 = sphi %s763_s13, %s917_s13   ;;  %s711_s12 = sphi %s761_s12, %s916_s12  }
   0x7   : > { %s38_s20 = sadd.s32 1, %s727_s16  ;;  %s65_s21 = sadd.s32 1, %s719_s14 }
   0x8   : > { %p40_p0 = scmp.ge.s32.totalorder %s38_s20, 2  ;;  %p72_p1 = scmp.ne.s32.totalorder %s719_s14, %s715_s13 }
   0x9   : > { %p73_p2 = scmp.eq.s32.totalorder %s731_s17, 0  ;;  %p78_p3 = scmp.ne.s32.totalorder %s715_s13, %s711_s12 }
   0xa   : > { %s922_s20 = smov (%p40_p0, %s38_s20), 0  ;;  %p79_p5 = scmp.eq.s32.totalorder %s520_s18, 0 }
   0xb   : > { %p802_p4 = por %p73_p2, %p72_p1  ;;  %s60_s23 = ssub.s32 %s727_s16, %s922_s20 }
   0xc   : > { %p158_p6 = scmp.eq.s32.totalorder %s520_s18, 1  ;;  %p63_p7 = scmp.eq.s32.totalorder %s60_s23, 0 }
   0xd   : > { %p808_p8 = por %p79_p5, %p78_p3  ;;  %p164_p10 = scmp.eq.s32.totalorder %s521_s19, 1 }
   0xe   : > { %p812_p9 = por %p158_p6, %p72_p1  ;;  %p566_p13 = scmp.lt.s32.totalorder %s731_s17, 2 }
   0xf   : > { %s817_s26 = scalar_select %p63_p7, %s719_s14, %s65_s21  }
  0x10   : > { %p819_p11 = por %p164_p10, %p78_p3  ;;  %s198_s28 = sand.u32 1, %s719_s14  }
  0x11   : > { %s526_s29 = sshll.u32 %s198_s28, 5  ;;  %s537_s30 = sshll.u32 %s727_s16, 9 }
  0x12   : > { %s218_s6 = scalar_lea.hbm %s906_s0, %s537_s30  ;;  %s202_s7 = scalar_lea.vmem [#allocation2], %s526_s29 }
  0x13   : > { %s219_s8 = sshll.u32 %s202_s7, 4  ;;  %p832_p0 = pnand %p566_p13, %p802_p4  ;;  %s220_s8 = int_to_ptr.vmem [resolvable:$true] %s219_s8 }
  0x14   : > { %p529_p1 = scmp.ge.s32.totalorder %s731_s17, 1  ;;  %s199_s10 = scalar_lea.sflag [#allocation3], %s198_s28 }
  0x15   : > { %p625_p2 = pneg %p832_p0  ;;  %s636_s11 = scalar_lea.vmem %s220_s8, 512 }
  0x16   : > { %p637_p3 = scmp.ne.s32.totalorder %s220_s8, %s636_s11  ;;  %s733_s18 = smov [#allocation2]  }
  0x17   : > { %s641_s19 = sshll.u32 %s733_s18, 4  ;;  %s642_s19 = int_to_ptr.vmem [resolvable:$false] %s641_s19 }
  0x18   : > { %p639_p5 = pnand %p637_p3, %p625_p2  ;;  %s643_s21 = scalar_lea.vmem %s642_s19, 1024 }
  0x19   : > { %p644_p7 = scmp.lt.s32.totalorder %s220_s8, %s642_s19  ;;  %p645_p10 = scmp.lt.s32.totalorder %s643_s21, %s636_s11 }
  0x1a   : > { %p640_p6 = pneg %p639_p5 }
  0x1b   : > { %p646_p12 = por %p645_p10, %p644_p7 }
  0x1d   : > { %p647_p4 = pnand %p646_p12, %p640_p6 }
  0x1f   : > { %650 = shalt.err (!%p647_p4)
}
  0x20   : > { %s734_s22 = smov 256   ;;  %s735_s23 = smov 16  }
  0x21   : > { %561 = dma.hbm_to_vmem [thread:$0]  (!%p832_p0), %s218_s6, 512, %s220_s8, %s199_s10, %s734_s22, %s734_s22, %s735_s23  }
  0x22   : > { %p227_p13 = scmp.lt.s32.totalorder %s731_s17, 3 }
  0x24   : > { %p228_p2 = pnand %p529_p1, %p227_p13 }
  0x25   : > { %s845_s28 = sand.u32 (!%p228_p2), 1, %s715_s13  }
  0x26   : > { %231 = sbr.rel (%p228_p2) target bundleno = 381 (0x17d), region = 32  ;;  %s530_s29 = sshll.u32 (!%p228_p2), %s845_s28, 5 }
  0x27   : > { %s234_s30 = scalar_lea.sflag (!%p228_p2), [#allocation3], %s845_s28  ;;  %s237_s4 = scalar_lea.vmem (!%p228_p2), [#allocation2], %s530_s29 }
  0x2b   : > { %702 = dma.done.wait (%p808_p8), %s234_s30, 512  }
  0x2c   : > { %704 = vsyncadd (%p808_p8), %s234_s30, 4294966784  ;;  %v736_v0 = vmov 0.0   ;;  %vm737_vm0 = vmmov 0   ;;  %v288_v1 = vld [vmem:[%s237_s4 + $0x10] sm:$0xff]  ;;  %v285_v2 = vld [vmem:[%s237_s4] sm:$0xff]  ;;  %s738_s5 = smov 127  }
  0x2d   : > { %543 = vmatprep.subr.mxu0 %v736_v0  ;;  %551 = vmatprep.mubr.msk.f32.mxu0 %vm737_vm0, %v736_v0  ;;  %v289_v3 = vld [vmem:[%s237_s4 + $0x18] sm:$0xff]  ;;  %v287_v4 = vld [vmem:[%s237_s4 + $0x8] sm:$0xff]  ;;  %v739_v5 = vmov 0   ;;  %v308_v6 = vld [vmem:[%s908_s2] sm:$0xff]  ;;  %vm296_vm1 = vcmask 1039360   ;;  %vm314_vm2 = vcmask 261120  }
  0x2e   : > { %301 = vrot.lane.b32.xlu0 %v288_v1, %s738_s5  ;;  %292 = vrot.lane.b32.xlu1 %v285_v2, %s738_s5  ;;  %v307_v13 = vld [vmem:[%s907_s1] sm:$0xff]  ;;  %s531_s9 = sshll.u32 %s845_s28, 3  ;;  %s534_s10 = sshll.u32 %s723_s15, 7 }
  0x2f   : > { %622 = vset.pattern.permute.xlu0 %v739_v5  ;;  %s267_s11 = scalar_lea.vmem [#allocation5], %s531_s9  ;;  %s864_s22 = scalar_lea.hbm %s909_s3, %s534_s10 }
  0x30   : > { %s405_s18 = sshll.u32 %s267_s11, 4  ;;  %s390_s23 = scalar_lea.sflag [#allocation4], %s845_s28  ;;  %s406_s18 = int_to_ptr.vmem [resolvable:$true] %s405_s18 }
  0x31   : > { %s651_s29 = scalar_lea.vmem %s406_s18, 128  ;;  %s740_s30 = smov [#allocation5]  }
  0x32   : > { %303 = vrot.lane.b32.xlu0 %v289_v3, %s738_s5  ;;  %294 = vrot.lane.b32.xlu1 %v287_v4, %s738_s5  ;;  %p652_p8 = scmp.ne.s32.totalorder %s406_s18, %s651_s29  ;;  %s655_s15 = sshll.u32 %s740_s30, 4  ;;  %s656_s15 = int_to_ptr.vmem [resolvable:$false] %s655_s15 }
  0x33   : > { %s657_s4 = scalar_lea.vmem %s656_s15, 256  ;;  %p658_p1 = scmp.lt.s32.totalorder %s406_s18, %s656_s15 }
  0x34   : > { %p653_p12 = pnand %p652_p8, %p812_p9  ;;  %p659_p3 = scmp.lt.s32.totalorder %s657_s4, %s651_s29 }
  0x36   : > { %311 = vperm.xlu0 %622, %v308_v6   ;;  %p654_p0 = pneg %p653_p12  ;;  %p660_p5 = por %p659_p3, %p658_p1 }
  0x38   : > { %p661_p6 = pnand %p660_p5, %p654_p0 }
  0xa0   : > { %v302_v7 = vpop.permute.xlu0 %301  ;;  %v293_v8 = vpop.permute.xlu1 %292 }
  0xa4   : > { %v304_v9 = vpop.permute.xlu0 %303  ;;  %v295_v10 = vpop.permute.xlu1 %294 }
  0xa5   : > { %v305_v11 = vsel %vm296_vm1, %v302_v7, %v304_v9  ;;  %v297_v12 = vsel %vm296_vm1, %v293_v8, %v295_v10 }
  0xa6   : > { %544 = vmatpush3.msra.mxu0 %v305_v11 }
  0xa7   : > { %545 = vmatprep.subr.mxu0 %v736_v0 }
  0xa8   : > { %546 = vmatpush3.msra.mxu0 %v297_v12 }
  0xa9   : > { %547 = vmatprep.subr.mxu0 %v736_v0 }
  0xaa   : > { %548 = vmatpush3.msra.mxu0 %v288_v1 }
  0xab   : > { %549 = vmatprep.subr.mxu0 %v736_v0 }
  0xac   : > { %550 = vmatpush3.msra.mxu0 %v285_v2 }
  0xad   : > { %552 = vmatmul.mubr.msk.f32.vlgmr.msra.gmra.mxu0 %vm314_vm2, %v307_v13 }
  0xb1   : > { %v312_v14 = vpop.permute.xlu0 %311 }
 0x16d   : > { %v384_v15 = vpop.f32.mrf.mxu0 }
 0x16e   : > { %v385_v16 = vadd.f32 %v384_v15, %v312_v14 }
 0x16f   : > { %v553_v17 = vpop.f32.mrf.mxu0 }
 0x170   : > { %388 = vst [vmem:[%s267_s11] sm:$0xff] %v385_v16 }
 0x171   : > { %664 = shalt.err (!%p661_p6)
}
 0x172   : > { %s665_s5 = scalar_lea.hbm %s864_s22, 128  ;;  %s669_s7 = scalar_lea.hbm %s909_s3, 256 }
 0x173   : > { %p666_p7 = scmp.ne.s32.totalorder %s864_s22, %s665_s5  ;;  %p670_p13 = scmp.lt.s32.totalorder %s864_s22, %s909_s3 }
 0x174   : > { %p671_p2 = scmp.lt.s32.totalorder %s669_s7, %s665_s5 }
 0x175   : > { %p667_p10 = pnand %p666_p7, %p812_p9 }
 0x176   : > { %p672_p8 = por %p671_p2, %p670_p13 }
 0x177   : > { %p668_p4 = pneg %p667_p10 }
 0x179   : > { %p673_p12 = pnand %p672_p8, %p668_p4 }
 0x17b   : > { %676 = shalt.err (!%p673_p12)
}
 0x17c   : > { %556 = dma.vmem_to_hbm [thread:$0]  (%p812_p9), %s406_s18, 128, %s864_s22, %s390_s23  }
 0x17d PF: > { %s417_s9 = sand.u32 1, %s711_s12   ;;  %p915_p0 = scmp.ge.s32.totalorder %s731_s17, 2 }
 0x17e   : > { %s418_s10 = scalar_lea.sflag [#allocation4], %s417_s9 }
 0x17f   : > { %p563_p1 = pnand %p915_p0, %p819_p11 }
 0x181   : > { %p564_p3 = pneg %p563_p1 }
 0x183   : > { %706 = dma.done.wait (%p564_p3), %s418_s10, 128  }
 0x184   : > { %708 = vsyncadd (%p564_p3), %s418_s10, 4294967168  ;;  %s19_s17 = sadd.s32 1, %s731_s17   ;;  %s916_s12 = smov %s715_s13 }
 0x185   : > { %p16_p5 = scmp.ge.s32.totalorder %s19_s17, 4   ;;  %s917_s13 = smov %s719_s14 }
 0x186   : > { %s918_s14 = smov %s817_s26  ;;  %s919_s15 = smov %s727_s16 }
 0x187   : > { %s920_s16 = smov %s922_s20  ;;  %18 = sbr.rel (!%p16_p5) target bundleno = 6 (0x6), region = 83 }
 0x18c   :  { %423 = vsyncpa [#allocation3], 1 }
 0x18d   :  { %425 = vsyncpa [#allocation3 + $0x1], 1 }
 0x18e   :  { %426 = vsyncpa [#allocation4], 1 }
 0x18f   :  { %428 = vsyncpa [#allocation4 + $0x1], 1 }

// kernel: tpu_custom_call.1
= control target key start
LH: loop header
LB: loop body
LE: loop exit
PB: predicated region body
PF: predicated region fallthrough
CT: control target
= control target key end

     0   :  { %8 = vsyncpa [#allocation3], 0  ;;  %s906_s0 = inlined_call_operand.hbm [shape: f32[2,16,256], index: 0, kind: input, shape index: {}]   ;;  %s907_s1 = inlined_call_operand.vmem [shape: f32[8,32], index: 1, kind: input, shape index: {}]   ;;  %s908_s2 = inlined_call_operand.vmem [shape: f32[8,1], index: 2, kind: input, shape index: {}]   ;;  %s909_s3 = inlined_call_operand.hbm [shape: f32[2,8,128], index: 3, kind: output, shape index: {}]  }
   0x1   :  { %10 = vsyncpa [#allocation3 + $0x1], 0 }
   0x2   :  { %11 = vsyncpa [#allocation4], 0 }
   0x3   :  { %13 = vsyncpa [#allocation4 + $0x1], 0  ;;  %s761_s12 = smov 0   ;;  %s763_s13 = smov 0  }
   0x4   :  { %s765_s14 = smov 0   ;;  %s767_s15 = smov 0  }
   0x5   :  { %s769_s16 = smov 0   ;;  %s771_s17 = smov 0  }
   0x6 LB: > { %s520_s18 = sadd.s32 4294967295, %s731_s17   ;;  %s521_s19 = sadd.s32 4294967294, %s731_s17   ;;  %s731_s17 = sphi %s771_s17, %s19_s17   ;;  %s727_s16 = sphi %s769_s16, %s920_s16   ;;  %s723_s15 = sphi %s767_s15, %s919_s15   ;;  %s719_s14 = sphi %s765_s14, %s918_s14   ;;  %s715_s13 = sphi %s763_s13, %s917_s13   ;;  %s711_s12 = sphi %s761_s12, %s916_s12  }
   0x7   : > { %s38_s20 = sadd.s32 1, %s727_s16  ;;  %s65_s21 = sadd.s32 1, %s719_s14 }
   0x8   : > { %p40_p0 = scmp.ge.s32.totalorder %s38_s20, 2  ;;  %p72_p1 = scmp.ne.s32.totalorder %s719_s14, %s715_s13 }
   0x9   : > { %p73_p2 = scmp.eq.s32.totalorder %s731_s17, 0  ;;  %p78_p3 = scmp.ne.s32.totalorder %s715_s13, %s711_s12 }
   0xa   : > { %s922_s20 = smov (%p40_p0, %s38_s20), 0  ;;  %p79_p5 = scmp.eq.s32.totalorder %s520_s18, 0 }
   0xb   : > { %p802_p4 = por %p73_p2, %p72_p1  ;;  %s60_s23 = ssub.s32 %s727_s16, %s922_s20 }
   0xc   : > { %p158_p6 = scmp.eq.s32.totalorder %s520_s18, 1  ;;  %p63_p7 = scmp.eq.s32.totalorder %s60_s23, 0 }
   0xd   : > { %p808_p8 = por %p79_p5, %p78_p3  ;;  %p164_p10 = scmp.eq.s32.totalorder %s521_s19, 1 }
   0xe   : > { %p812_p9 = por %p158_p6, %p72_p1  ;;  %p566_p13 = scmp.lt.s32.totalorder %s731_s17, 2 }
   0xf   : > { %s817_s26 = scalar_select %p63_p7, %s719_s14, %s65_s21  }
  0x10   : > { %p819_p11 = por %p164_p10, %p78_p3  ;;  %s198_s28 = sand.u32 1, %s719_s14  }
  0x11   : > { %s526_s29 = sshll.u32 %s198_s28, 5  ;;  %s537_s30 = sshll.u32 %s727_s16, 9 }
  0x12   : > { %s218_s6 = scalar_lea.hbm %s906_s0, %s537_s30  ;;  %s202_s7 = scalar_lea.vmem [#allocation2], %s526_s29 }
  0x13   : > { %s219_s8 = sshll.u32 %s202_s7, 4  ;;  %p832_p0 = pnand %p566_p13, %p802_p4  ;;  %s220_s8 = int_to_ptr.vmem [resolvable:$true] %s219_s8 }
  0x14   : > { %p529_p1 = scmp.ge.s32.totalorder %s731_s17, 1  ;;  %s199_s10 = scalar_lea.sflag [#allocation3], %s198_s28 }
  0x15   : > { %p625_p2 = pneg %p832_p0  ;;  %s636_s11 = scalar_lea.vmem %s220_s8, 512 }
  0x16   : > { %p637_p3 = scmp.ne.s32.totalorder %s220_s8, %s636_s11  ;;  %s733_s18 = smov [#allocation2]  }
  0x17   : > { %s641_s19 = sshll.u32 %s733_s18, 4  ;;  %s642_s19 = int_to_ptr.vmem [resolvable:$false] %s641_s19 }
  0x18   : > { %p639_p5 = pnand %p637_p3, %p625_p2  ;;  %s643_s21 = scalar_lea.vmem %s642_s19, 1024 }
  0x19   : > { %p644_p7 = scmp.lt.s32.totalorder %s220_s8, %s642_s19  ;;  %p645_p10 = scmp.lt.s32.totalorder %s643_s21, %s636_s11 }
  0x1a   : > { %p640_p6 = pneg %p639_p5 }
  0x1b   : > { %p646_p12 = por %p645_p10, %p644_p7 }
  0x1d   : > { %p647_p4 = pnand %p646_p12, %p640_p6 }
  0x1f   : > { %650 = shalt.err (!%p647_p4)
}
  0x20   : > { %s734_s22 = smov 256   ;;  %s735_s23 = smov 16  }
  0x21   : > { %561 = dma.hbm_to_vmem [thread:$0]  (!%p832_p0), %s218_s6, 512, %s220_s8, %s199_s10, %s734_s22, %s734_s22, %s735_s23  }
  0x22   : > { %p227_p13 = scmp.lt.s32.totalorder %s731_s17, 3 }
  0x24   : > { %p228_p2 = pnand %p529_p1, %p227_p13 }
  0x25   : > { %s845_s28 = sand.u32 (!%p228_p2), 1, %s715_s13  }
  0x26   : > { %231 = sbr.rel (%p228_p2) target bundleno = 381 (0x17d), region = 32  ;;  %s530_s29 = sshll.u32 (!%p228_p2), %s845_s28, 5 }
  0x27   : > { %s234_s30 = scalar_lea.sflag (!%p228_p2), [#allocation3], %s845_s28  ;;  %s237_s4 = scalar_lea.vmem (!%p228_p2), [#allocation2], %s530_s29 }
  0x2b   : > { %702 = dma.done.wait (%p808_p8), %s234_s30, 512  }
  0x2c   : > { %704 = vsyncadd (%p808_p8), %s234_s30, 4294966784  ;;  %v736_v0 = vmov 0.0   ;;  %vm737_vm0 = vmmov 0   ;;  %v288_v1 = vld [vmem:[%s237_s4 + $0x10] sm:$0xff]  ;;  %v285_v2 = vld [vmem:[%s237_s4] sm:$0xff]  ;;  %s738_s5 = smov 127  }
  0x2d   : > { %543 = vmatprep.subr.mxu0 %v736_v0  ;;  %551 = vmatprep.mubr.msk.f32.mxu0 %vm737_vm0, %v736_v0  ;;  %v289_v3 = vld [vmem:[%s237_s4 + $0x18] sm:$0xff]  ;;  %v287_v4 = vld [vmem:[%s237_s4 + $0x8] sm:$0xff]  ;;  %v739_v5 = vmov 0   ;;  %v308_v6 = vld [vmem:[%s908_s2] sm:$0xff]  ;;  %vm296_vm1 = vcmask 1039360   ;;  %vm314_vm2 = vcmask 261120  }
  0x2e   : > { %301 = vrot.lane.b32.xlu0 %v288_v1, %s738_s5  ;;  %292 = vrot.lane.b32.xlu1 %v285_v2, %s738_s5  ;;  %v307_v13 = vld [vmem:[%s907_s1] sm:$0xff]  ;;  %s531_s9 = sshll.u32 %s845_s28, 3  ;;  %s534_s10 = sshll.u32 %s723_s15, 7 }
  0x2f   : > { %622 = vset.pattern.permute.xlu0 %v739_v5  ;;  %s267_s11 = scalar_lea.vmem [#allocation5], %s531_s9  ;;  %s864_s22 = scalar_lea.hbm %s909_s3, %s534_s10 }
  0x30   : > { %s405_s18 = sshll.u32 %s267_s11, 4  ;;  %s390_s23 = scalar_lea.sflag [#allocation4], %s845_s28  ;;  %s406_s18 = int_to_ptr.vmem [resolvable:$true] %s405_s18 }
  0x31   : > { %s651_s29 = scalar_lea.vmem %s406_s18, 128  ;;  %s740_s30 = smov [#allocation5]  }
  0x32   : > { %303 = vrot.lane.b32.xlu0 %v289_v3, %s738_s5  ;;  %294 = vrot.lane.b32.xlu1 %v287_v4, %s738_s5  ;;  %p652_p8 = scmp.ne.s32.totalorder %s406_s18, %s651_s29  ;;  %s655_s15 = sshll.u32 %s740_s30, 4  ;;  %s656_s15 = int_to_ptr.vmem [resolvable:$false] %s655_s15 }
  0x33   : > { %s657_s4 = scalar_lea.vmem %s656_s15, 256  ;;  %p658_p1 = scmp.lt.s32.totalorder %s406_s18, %s656_s15 }
  0x34   : > { %p653_p12 = pnand %p652_p8, %p812_p9  ;;  %p659_p3 = scmp.lt.s32.totalorder %s657_s4, %s651_s29 }
  0x36   : > { %311 = vperm.xlu0 %622, %v308_v6   ;;  %p654_p0 = pneg %p653_p12  ;;  %p660_p5 = por %p659_p3, %p658_p1 }
  0x38   : > { %p661_p6 = pnand %p660_p5, %p654_p0 }
  0xa0   : > { %v302_v7 = vpop.permute.xlu0 %301  ;;  %v293_v8 = vpop.permute.xlu1 %292 }
  0xa4   : > { %v304_v9 = vpop.permute.xlu0 %303  ;;  %v295_v10 = vpop.permute.xlu1 %294 }
  0xa5   : > { %v305_v11 = vsel %vm296_vm1, %v302_v7, %v304_v9  ;;  %v297_v12 = vsel %vm296_vm1, %v293_v8, %v295_v10 }
  0xa6   : > { %544 = vmatpush3.msra.mxu0 %v305_v11 }
  0xa7   : > { %545 = vmatprep.subr.mxu0 %v736_v0 }
  0xa8   : > { %546 = vmatpush3.msra.mxu0 %v297_v12 }
  0xa9   : > { %547 = vmatprep.subr.mxu0 %v736_v0 }
  0xaa   : > { %548 = vmatpush3.msra.mxu0 %v288_v1 }
  0xab   : > { %549 = vmatprep.subr.mxu0 %v736_v0 }
  0xac   : > { %550 = vmatpush3.msra.mxu0 %v285_v2 }
  0xad   : > { %552 = vmatmul.mubr.msk.f32.vlgmr.msra.gmra.mxu0 %vm314_vm2, %v307_v13 }
  0xb1   : > { %v312_v14 = vpop.permute.xlu0 %311 }
 0x16d   : > { %v384_v15 = vpop.f32.mrf.mxu0 }
 0x16e   : > { %v385_v16 = vadd.f32 %v384_v15, %v312_v14 }
 0x16f   : > { %v553_v17 = vpop.f32.mrf.mxu0 }
 0x170   : > { %388 = vst [vmem:[%s267_s11] sm:$0xff] %v385_v16 }
 0x171   : > { %664 = shalt.err (!%p661_p6)
}
 0x172   : > { %s665_s5 = scalar_lea.hbm %s864_s22, 128  ;;  %s669_s7 = scalar_lea.hbm %s909_s3, 256 }
 0x173   : > { %p666_p7 = scmp.ne.s32.totalorder %s864_s22, %s665_s5  ;;  %p670_p13 = scmp.lt.s32.totalorder %s864_s22, %s909_s3 }
 0x174   : > { %p671_p2 = scmp.lt.s32.totalorder %s669_s7, %s665_s5 }
 0x175   : > { %p667_p10 = pnand %p666_p7, %p812_p9 }
 0x176   : > { %p672_p8 = por %p671_p2, %p670_p13 }
 0x177   : > { %p668_p4 = pneg %p667_p10 }
 0x179   : > { %p673_p12 = pnand %p672_p8, %p668_p4 }
 0x17b   : > { %676 = shalt.err (!%p673_p12)
}
 0x17c   : > { %556 = dma.vmem_to_hbm [thread:$0]  (%p812_p9), %s406_s18, 128, %s864_s22, %s390_s23  }
 0x17d PF: > { %s417_s9 = sand.u32 1, %s711_s12   ;;  %p915_p0 = scmp.ge.s32.totalorder %s731_s17, 2 }
 0x17e   : > { %s418_s10 = scalar_lea.sflag [#allocation4], %s417_s9 }
 0x17f   : > { %p563_p1 = pnand %p915_p0, %p819_p11 }
 0x181   : > { %p564_p3 = pneg %p563_p1 }
 0x183   : > { %706 = dma.done.wait (%p564_p3), %s418_s10, 128  }
 0x184   : > { %708 = vsyncadd (%p564_p3), %s418_s10, 4294967168  ;;  %s19_s17 = sadd.s32 1, %s731_s17   ;;  %s916_s12 = smov %s715_s13 }
 0x185   : > { %p16_p5 = scmp.ge.s32.totalorder %s19_s17, 4   ;;  %s917_s13 = smov %s719_s14 }
 0x186   : > { %s918_s14 = smov %s817_s26  ;;  %s919_s15 = smov %s727_s16 }
 0x187   : > { %s920_s16 = smov %s922_s20  ;;  %18 = sbr.rel (!%p16_p5) target bundleno = 6 (0x6), region = 83 }
 0x18c   :  { %423 = vsyncpa [#allocation3], 1 }
 0x18d   :  { %425 = vsyncpa [#allocation3 + $0x1], 1 }
 0x18e   :  { %426 = vsyncpa [#allocation4], 1 }
 0x18f   :  { %428 = vsyncpa [#allocation4 + $0x1], 1 }

// kernel: tpu_custom_call.1
= control target key start
LH: loop header
LB: loop body
LE: loop exit
PB: predicated region body
PF: predicated region fallthrough
CT: control target
= control target key end

     0   :  { %s1057_s0 = inlined_call_operand.hbm [shape: f32[2,16,256], index: 0, kind: input, shape index: {}]   ;;  %s1058_s1 = inlined_call_operand.hbm [shape: f32[2,16,256], index: 1, kind: input, shape index: {}]   ;;  %s1059_s2 = inlined_call_operand.vmem [shape: f32[8,32], index: 2, kind: input, shape index: {}]   ;;  %s1060_s3 = inlined_call_operand.vmem [shape: f32[8,1], index: 3, kind: input, shape index: {}]   ;;  %s1061_s4 = inlined_call_operand.hbm [shape: f32[2,8,128], index: 4, kind: output, shape index: {}]  }
   0x1   :  { %1064 = sst [smem:[#allocation14_spill]] %s1057_s0 }
   0x2   :  { %9 = vsyncpa [#allocation3], 0 }
   0x3   :  { %11 = vsyncpa [#allocation3 + $0x1], 0 }
   0x4   :  { %12 = vsyncpa [#allocation6], 0 }
   0x5   :  { %14 = vsyncpa [#allocation6 + $0x1], 0 }
   0x6   :  { %15 = vsyncpa [#allocation4], 0 }
   0x7   :  { %17 = vsyncpa [#allocation4 + $0x1], 0  ;;  %s875_s15 = smov 0   ;;  %s877_s16 = smov 0  }
   0x8   :  { %s879_s17 = smov 0   ;;  %s881_s18 = smov 0  }
   0x9   :  { %s883_s19 = smov 0   ;;  %s885_s20 = smov 0  }
   0xa LB: > { %1065 = sst [smem:[#allocation11_spill]] %s826_s17  ;;  %s583_s21 = sadd.s32 4294967295, %s838_s20   ;;  %s838_s20 = sphi %s885_s20, %s23_s20   ;;  %s834_s19 = sphi %s883_s19, %s1081_s19   ;;  %s830_s18 = sphi %s881_s18, %s1080_s18   ;;  %s826_s17 = sphi %s879_s17, %s1076_s17   ;;  %s822_s16 = sphi %s877_s16, %s1079_s16   ;;  %s818_s15 = sphi %s875_s15, %s1078_s15  }
   0xb   : > { %s584_s22 = sadd.s32 4294967294, %s838_s20   ;;  %s42_s23 = sadd.s32 1, %s834_s19 }
   0xc   : > { %s51_s24 = sadd.s32 1, %s826_s17  ;;  %p44_p0 = scmp.ge.s32.totalorder %s42_s23, 2 }
   0xd   : > { %p58_p1 = scmp.ne.s32.totalorder %s826_s17, %s822_s16  ;;  %p59_p2 = scmp.eq.s32.totalorder %s838_s20, 0 }
   0xe   : > { %p64_p3 = scmp.ne.s32.totalorder %s822_s16, %s818_s15  ;;  %s1083_s23 = smov (%p44_p0, %s42_s23), 0 }
   0xf   : > { %1066 = sst [smem:[#allocation12_spill]] %s1083_s23  ;;  %p916_p4 = por %p59_p2, %p58_p1 }
  0x10   : > { %p65_p5 = scmp.eq.s32.totalorder %s583_s21, 0  ;;  %s46_s26 = ssub.s32 %s834_s19, %s1083_s23 }
  0x11   : > { %p174_p6 = scmp.eq.s32.totalorder %s583_s21, 1  ;;  %p49_p7 = scmp.eq.s32.totalorder %s46_s26, 0 }
  0x12   : > { %p922_p8 = por %p65_p5, %p64_p3  ;;  %p180_p10 = scmp.eq.s32.totalorder %s584_s22, 1 }
  0x13   : > { %p926_p9 = por %p174_p6, %p58_p1  ;;  %p588_p12 = scmp.ge.s32.totalorder %s838_s20, 2 }
  0x14   : > { %s931_s29 = scalar_select %p49_p7, %s826_s17, %s51_s24  }
  0x15   : > { %p933_p11 = por %p180_p10, %p64_p3  ;;  %p639_p13 = scmp.lt.s32.totalorder %s838_s20, 2 }
  0x16   : > { %1070 = sst [smem:[#allocation13_spill]] %s931_s29  ;;  %s940_s5 = sand.u32 1, %s826_s17  }
  0x17   : > { %s589_s6 = sshll.u32 %s940_s5, 4  ;;  %s604_s7 = sshll.u32 %s834_s19, 9 }
  0x18   : > { %s1072_s0 = sld [smem:[#allocation14_spill]]  ;;  %s218_s11 = scalar_lea.vmem [#allocation2], %s589_s6 }
  0x19   : > { %s226_s12 = sshll.u32 %s218_s11, 4  ;;  %p953_p0 = pnand %p639_p13, %p916_p4  ;;  %s227_s12 = int_to_ptr.vmem [resolvable:$true] %s226_s12 }
  0x1a   : > { %s215_s14 = scalar_lea.sflag [#allocation3], %s940_s5  ;;  %s710_s21 = scalar_lea.vmem %s227_s12, 256 }
  0x1b   : > { %p699_p1 = pneg %p953_p0  ;;  %p711_p2 = scmp.ne.s32.totalorder %s227_s12, %s710_s21 }
  0x1c   : > { %s840_s22 = smov [#allocation2]  }
  0x1d   : > { %p713_p3 = pnand %p711_p2, %p699_p1  ;;  %s715_s24 = sshll.u32 %s840_s22, 4  ;;  %s716_s24 = int_to_ptr.vmem [resolvable:$false] %s715_s24 }
  0x1e   : > { %s225_s10 = scalar_lea.hbm %s1072_s0, %s604_s7  ;;  %s717_s26 = scalar_lea.vmem %s716_s24, 512 }
  0x1f   : > { %p714_p5 = pneg %p713_p3  ;;  %p718_p6 = scmp.lt.s32.totalorder %s227_s12, %s716_s24 }
  0x20   : > { %p719_p4 = scmp.lt.s32.totalorder %s717_s26, %s710_s21 }
  0x22   : > { %p720_p7 = por %p719_p4, %p718_p6 }
  0x24   : > { %p721_p10 = pnand %p720_p7, %p714_p5 }
  0x26   : > { %724 = shalt.err (!%p721_p10)
}
  0x27   : > { %s841_s25 = smov 256   ;;  %s842_s8 = smov 128  }
  0x28   : > { %s843_s9 = smov 8   ;;  %p595_p13 = scmp.ge.s32.totalorder %s838_s20, 1 }
  0x29   : > { %631 = dma.hbm_to_vmem [thread:$0]  (!%p953_p0), %s225_s10, 256, %s227_s12, %s215_s14, %s841_s25, %s842_s8, %s843_s9  }
  0x2a   : > { %p257_p2 = scmp.lt.s32.totalorder %s838_s20, 3  ;;  %s486_s24 = scalar_lea.hbm %s1058_s1, %s604_s7 }
  0x2b   : > { %s487_s26 = scalar_lea.hbm %s486_s24, 128  ;;  %s240_s0 = scalar_lea.vmem [#allocation5], %s589_s6 }
  0x2c   : > { %p969_p3 = pnand %p595_p13, %p257_p2  ;;  %s249_s23 = sshll.u32 %s240_s0, 4  ;;  %s250_s23 = int_to_ptr.vmem [resolvable:$true] %s249_s23 }
  0x2d   : > { %s237_s29 = scalar_lea.sflag [#allocation6], %s940_s5  ;;  %s738_s17 = scalar_lea.vmem %s250_s23, 256 }
  0x2e   : > { %p739_p5 = scmp.ne.s32.totalorder %s250_s23, %s738_s17  ;;  %s844_s10 = smov [#allocation5]  }
  0x2f   : > { %s743_s12 = sshll.u32 %s844_s10, 4  ;;  %s744_s12 = int_to_ptr.vmem [resolvable:$false] %s743_s12 }
  0x30   : > { %p741_p6 = pnand %p739_p5, %p699_p1  ;;  %s745_s14 = scalar_lea.vmem %s744_s12, 512 }
  0x31   : > { %p746_p7 = scmp.lt.s32.totalorder %s250_s23, %s744_s12  ;;  %p747_p10 = scmp.lt.s32.totalorder %s745_s14, %s738_s17 }
  0x32   : > { %p742_p4 = pneg %p741_p6 }
  0x33   : > { %p748_p13 = por %p747_p10, %p746_p7 }
  0x35   : > { %p749_p2 = pnand %p748_p13, %p742_p4 }
  0x37   : > { %752 = shalt.err (!%p749_p2)
}
  0x38   : > { %634 = dma.hbm_to_vmem [thread:$0]  (!%p953_p0), %s487_s26, 256, %s250_s23, %s237_s29, %s841_s25, %s842_s8, %s843_s9  }
  0x39   : > { %261 = sbr.rel (%p969_p3) target bundleno = 402 (0x192), region = 36  ;;  %s991_s0 = sand.u32 (!%p969_p3), 1, %s822_s16  }
  0x3a   : > { %s596_s5 = sshll.u32 (!%p969_p3), %s991_s0, 4  ;;  %s264_s6 = scalar_lea.sflag (!%p969_p3), [#allocation3], %s991_s0 }
  0x3b   : > { %s267_s17 = scalar_lea.vmem (!%p969_p3), [#allocation2], %s596_s5 }
  0x3e   : > { %805 = dma.done.wait (%p922_p8), %s264_s6, 256  }
  0x3f   : > { %807 = vsyncadd (%p922_p8), %s264_s6, 4294967040  ;;  %s273_s23 = scalar_lea.sflag [#allocation6], %s991_s0  ;;  %s276_s29 = scalar_lea.vmem [#allocation5], %s596_s5 }
  0x40   : > { %809 = dma.done.wait (%p922_p8), %s273_s23, 256  }
  0x41   : > { %811 = vsyncadd (%p922_p8), %s273_s23, 4294967040  ;;  %v845_v0 = vmov 0.0   ;;  %vm846_vm0 = vmmov 0   ;;  %v324_v1 = vld [vmem:[%s267_s17 + $0x8] sm:$0xff]  ;;  %v323_v2 = vld [vmem:[%s267_s17] sm:$0xff]  ;;  %s847_s7 = smov 127  }
  0x42   : > { %611 = vmatprep.subr.mxu0 %v845_v0  ;;  %619 = vmatprep.mubr.msk.f32.mxu0 %vm846_vm0, %v845_v0  ;;  %v326_v3 = vld [vmem:[%s276_s29 + $0x8] sm:$0xff]  ;;  %v325_v4 = vld [vmem:[%s276_s29] sm:$0xff]  ;;  %v848_v5 = vmov 0   ;;  %vm333_vm1 = vcmask 1039360   ;;  %vm351_vm2 = vcmask 261120   ;;  %s598_s9 = sshll.u32 %s991_s0, 3 }
  0x43   : > { %338 = vrot.lane.b32.xlu0 %v324_v1, %s847_s7  ;;  %329 = vrot.lane.b32.xlu1 %v323_v2, %s847_s7  ;;  %v345_v6 = vld [vmem:[%s1060_s3] sm:$0xff]  ;;  %s601_s11 = sshll.u32 %s830_s18, 7  ;;  %s313_s21 = scalar_lea.vmem [#allocation7], %s598_s9 }
  0x44   : > { %696 = vset.pattern.permute.xlu0 %v848_v5  ;;  %v344_v13 = vld [vmem:[%s1059_s2] sm:$0xff]  ;;  %s442_s22 = sshll.u32 %s313_s21, 4  ;;  %s1015_s10 = scalar_lea.hbm %s1061_s4, %s601_s11  ;;  %s443_s22 = int_to_ptr.vmem [resolvable:$true] %s442_s22 }
  0x45   : > { %s427_s12 = scalar_lea.sflag [#allocation4], %s991_s0  ;;  %s754_s14 = scalar_lea.vmem %s443_s22, 128 }
  0x46   : > { %p755_p8 = scmp.ne.s32.totalorder %s443_s22, %s754_s14  ;;  %s849_s5 = smov [#allocation7]  }
  0x47   : > { %340 = vrot.lane.b32.xlu0 %v326_v3, %s847_s7  ;;  %331 = vrot.lane.b32.xlu1 %v325_v4, %s847_s7  ;;  %s758_s18 = sshll.u32 %s849_s5, 4  ;;  %s759_s18 = int_to_ptr.vmem [resolvable:$false] %s758_s18 }
  0x48   : > { %p756_p0 = pnand %p755_p8, %p926_p9  ;;  %s760_s6 = scalar_lea.vmem %s759_s18, 256 }
  0x49   : > { %p761_p3 = scmp.lt.s32.totalorder %s443_s22, %s759_s18  ;;  %p762_p5 = scmp.lt.s32.totalorder %s760_s6, %s754_s14 }
  0x4a   : > { %p757_p1 = pneg %p756_p0 }
  0x4b   : > { %348 = vperm.xlu0 %696, %v345_v6   ;;  %p763_p6 = por %p762_p5, %p761_p3 }
  0x4d   : > { %p764_p4 = pnand %p763_p6, %p757_p1 }
  0xb5   : > { %v339_v7 = vpop.permute.xlu0 %338  ;;  %v330_v8 = vpop.permute.xlu1 %329 }
  0xb9   : > { %v341_v9 = vpop.permute.xlu0 %340  ;;  %v332_v10 = vpop.permute.xlu1 %331 }
  0xba   : > { %v342_v11 = vsel %vm333_vm1, %v339_v7, %v341_v9  ;;  %v334_v12 = vsel %vm333_vm1, %v330_v8, %v332_v10 }
  0xbb   : > { %612 = vmatpush3.msra.mxu0 %v342_v11 }
  0xbc   : > { %613 = vmatprep.subr.mxu0 %v845_v0 }
  0xbd   : > { %614 = vmatpush3.msra.mxu0 %v334_v12 }
  0xbe   : > { %615 = vmatprep.subr.mxu0 %v845_v0 }
  0xbf   : > { %616 = vmatpush3.msra.mxu0 %v324_v1 }
  0xc0   : > { %617 = vmatprep.subr.mxu0 %v845_v0 }
  0xc1   : > { %618 = vmatpush3.msra.mxu0 %v323_v2 }
  0xc2   : > { %620 = vmatmul.mubr.msk.f32.vlgmr.msra.gmra.mxu0 %vm351_vm2, %v344_v13 }
  0xc6   : > { %v349_v14 = vpop.permute.xlu0 %348 }
 0x182   : > { %v421_v15 = vpop.f32.mrf.mxu0 }
 0x183   : > { %v422_v16 = vadd.f32 %v421_v15, %v349_v14 }
 0x184   : > { %v621_v17 = vpop.f32.mrf.mxu0 }
 0x185   : > { %425 = vst [vmem:[%s313_s21] sm:$0xff] %v422_v16 }
 0x186   : > { %767 = shalt.err (!%p764_p4)
}
 0x187   : > { %s768_s17 = scalar_lea.hbm %s1015_s10, 128  ;;  %s772_s29 = scalar_lea.hbm %s1061_s4, 256 }
 0x188   : > { %p769_p7 = scmp.ne.s32.totalorder %s1015_s10, %s768_s17  ;;  %p773_p2 = scmp.lt.s32.totalorder %s1015_s10, %s1061_s4 }
 0x189   : > { %p774_p8 = scmp.lt.s32.totalorder %s772_s29, %s768_s17 }
 0x18a   : > { %p770_p10 = pnand %p769_p7, %p926_p9 }
 0x18b   : > { %p775_p0 = por %p774_p8, %p773_p2 }
 0x18c   : > { %p771_p13 = pneg %p770_p10 }
 0x18e   : > { %p776_p1 = pnand %p775_p0, %p771_p13 }
 0x190   : > { %779 = shalt.err (!%p776_p1)
}
 0x191   : > { %626 = dma.vmem_to_hbm [thread:$0]  (%p926_p9), %s443_s22, 128, %s1015_s10, %s427_s12  }
 0x192 PF: > { %s454_s25 = sand.u32 1, %s818_s15   ;;  %p636_p3 = pnand %p588_p12, %p933_p11 }
 0x193   : > { %s455_s27 = scalar_lea.sflag [#allocation4], %s454_s25 }
 0x194   : > { %p637_p5 = pneg %p636_p3 }
 0x196   : > { %813 = dma.done.wait (%p637_p5), %s455_s27, 128  }
 0x197   : > { %815 = vsyncadd (%p637_p5), %s455_s27, 4294967168  ;;  %s23_s20 = sadd.s32 1, %s838_s20   ;;  %s1075_s8 = sld [smem:[#allocation11_spill]] }
 0x198   : > { %p20_p6 = scmp.ge.s32.totalorder %s23_s20, 4   ;;  %s1076_s17 = sld [smem:[#allocation13_spill]] }
 0x199   : > { %s1077_s28 = sld [smem:[#allocation12_spill]]  ;;  %s1078_s15 = smov %s822_s16 }
 0x19a   : > { %s1080_s18 = smov %s834_s19 }
 0x19b   :  { %22 = sbr.rel (!%p20_p6) target bundleno = 10 (0xa), region = 100 }
 0x19d   : > { %s1079_s16 = smov %s1075_s8 }
 0x19f   : > { %s1081_s19 = smov %s1077_s28 }
 0x1a0   :  { %460 = vsyncpa [#allocation3], 1 }
 0x1a1   :  { %462 = vsyncpa [#allocation3 + $0x1], 1 }
 0x1a2   :  { %463 = vsyncpa [#allocation6], 1 }
 0x1a3   :  { %465 = vsyncpa [#allocation6 + $0x1], 1 }
 0x1a4   :  { %466 = vsyncpa [#allocation4], 1 }
 0x1a5   :  { %468 = vsyncpa [#allocation4 + $0x1], 1 }

</bundles_post_ra>
